<compile_context>
chip_gen: v7x
topology: tpu7x:2x2x1
jax: 0.10.0
libtpu: 0.0.40
codegen_flags: <defaults>
</compile_context>

<pallas_src>
import jax
import jax.numpy as jnp
from jax.experimental import pallas as pl
from jax.experimental.pallas import tpu as pltpu

IN_FEATURES = 32
H1, H2, H3 = 16, 8, 8   # padded widths of the hidden layers (true widths: 10, 8, 4)


def _round_up(x, m):
    return (x + m - 1) // m * m


def mlp_kernel(x_ref, w1_ref, b1_ref, w2_ref, b2_ref,
               w3_ref, b3_ref, w4_ref, b4_ref, o_ref):
    # Batch tile -> feature-major: [TM, 32] -> [32, TM] (XLU), then cast to bf16 for the MXU.
    xT = jnp.transpose(x_ref[...]).astype(jnp.bfloat16)                  # [32, TM]

    # fc1: [16, 32] @ [32, TM] -> [16, TM]  (f32 accumulate on the MXU)
    h = jnp.dot(w1_ref[...], xT, preferred_element_type=jnp.float32)
    h = jnp.maximum(h + b1_ref[...], 0.0)

    # fc2: [8, 16] @ [16, TM] -> [8, TM]
    h = jnp.dot(w2_ref[...], h.astype(jnp.bfloat16),
                preferred_element_type=jnp.float32)
    h = jnp.maximum(h + b2_ref[...], 0.0)

    # fc3: [8, 8] @ [8, TM] -> [8, TM]
    h = jnp.dot(w3_ref[...], h.astype(jnp.bfloat16),
                preferred_element_type=jnp.float32)
    h = jnp.maximum(h + b3_ref[...], 0.0)

    # fc4 (4 -> 1): VPU broadcast-multiply + sublane reduce; scalar bias from SMEM.
    out = jnp.sum(h * w4_ref[...], axis=0, keepdims=True) + b4_ref[0, 0]  # [1, TM]
    o_ref[...] = out                                                      # lane-dense store


def _choose_tm(batch, tm_max):
    # Lane-dense batch tiles: multiple of 128, at least 128, regardless of caller tm_max.
    tm_max = max(128, (int(tm_max) // 128) * 128)
    # ~ceil(B/2) so large batches always give >= 2 grid steps (keeps both v7x TCs busy).
    half = _round_up(max(1, (batch + 1) // 2), 128)
    return min(tm_max, half)


def final_model_forward(x, params, *, tm_max=4096):
    """x: [B, 32] float32.  params: padded params from pad_params().  Returns [B, 1] f32."""
    (w1, b1), (w2, b2), (w3, b3), (w4, b4) = params
    B, F = x.shape
    assert F == IN_FEATURES, F

    TM = _choose_tm(B, tm_max)
    B_pad = _round_up(B, TM)
    if B_pad != B:
        x = jnp.pad(x, ((0, B_pad - B), (0, 0)))
    grid = (B_pad // TM,)

    const = lambda i: (0, 0)       # resident weights/biases (DMA'd once, constant block index)
    row_tile = lambda i: (i, 0)    # streamed x tiles over the batch grid
    out_tile = lambda i: (0, i)    # lane-dense output row, one [1, TM] slab per grid step

    flops = 2 * B_pad * (H1 * IN_FEATURES + H2 * H1 + H3 * H2 + H3)
    bytes_accessed = B_pad * (IN_FEATURES * 4 + 4) + 8 * 1024   # x + out + params (approx)

    out = pl.pallas_call(
        mlp_kernel,
        out_shape=jax.ShapeDtypeStruct((1, B_pad), jnp.float32),
        grid=grid,
        in_specs=[
            pl.BlockSpec((TM, IN_FEATURES), row_tile),          # x tile (the only HBM stream)
            pl.BlockSpec((H1, IN_FEATURES), const),             # w1 [16, 32] bf16
            pl.BlockSpec((H1, 1), const),                       # b1 [16, 1]  f32
            pl.BlockSpec((H2, H1), const),                      # w2 [8, 16]  bf16
            pl.BlockSpec((H2, 1), const),                       # b2 [8, 1]   f32
            pl.BlockSpec((H3, H2), const),                      # w3 [8, 8]   bf16
            pl.BlockSpec((H3, 1), const),                       # b3 [8, 1]   f32
            pl.BlockSpec((H3, 1), const),                       # w4 column   f32 (VPU path)
            pl.BlockSpec(memory_space=pltpu.MemorySpace.SMEM),  # b4 scalar (1, 1) f32
        ],
        out_specs=pl.BlockSpec((1, TM), out_tile),
        compiler_params=pltpu.CompilerParams(
            dimension_semantics=("parallel",),   # shard batch tiles across v7x's 2 TCs
        ),
        cost_estimate=pl.CostEstimate(
            flops=flops, transcendentals=0, bytes_accessed=bytes_accessed),
    )(x, w1, b1, w2, b2, w3, b3, w4, b4)

    return out[0, :B].reshape(B, 1)


def init_params(key):
    """PyTorch-style uniform(+-1/sqrt(fan_in)) init, weights in torch [out, in] layout."""
    dims = [(32, 10), (10, 8), (8, 4), (4, 1)]
    raw = []
    for fan_in, fan_out in dims:
        kw, kb, key = jax.random.split(key, 3)
        bound = 1.0 / (fan_in ** 0.5)
        w = jax.random.uniform(kw, (fan_out, fan_in), jnp.float32, -bound, bound)
        b = jax.random.uniform(kb, (fan_out,), jnp.float32, -bound, bound)
        raw.append((w, b))
    return raw


def pad_params(raw):
    """Zero-pad hidden dims (10->16, 4->8).  Exact: ReLU(0)=0 and zero rows/columns
    contribute nothing.  MXU weights are stored as bf16; biases / fc4 stay f32."""
    (w1, b1), (w2, b2), (w3, b3), (w4, b4) = raw
    w1p = jnp.zeros((H1, IN_FEATURES), jnp.float32).at[:10, :].set(w1).astype(jnp.bfloat16)
    b1p = jnp.zeros((H1, 1), jnp.float32).at[:10, 0].set(b1)
    w2p = jnp.zeros((H2, H1), jnp.float32).at[:, :10].set(w2).astype(jnp.bfloat16)
    b2p = b2.reshape(H2, 1).astype(jnp.float32)
    w3p = jnp.zeros((H3, H2), jnp.float32).at[:4, :].set(w3).astype(jnp.bfloat16)
    b3p = jnp.zeros((H3, 1), jnp.float32).at[:4, 0].set(b3)
    w4p = jnp.zeros((H3, 1), jnp.float32).at[:4, 0].set(w4[0])   # fc4 weight as a column (VPU)
    b4p = b4.reshape(1, 1).astype(jnp.float32)
    return (w1p, b1p), (w2p, b2p), (w3p, b3p), (w4p, b4p)


def reference_forward(x, raw):
    """Pure-JAX f32 reference matching the PyTorch module exactly."""
    (w1, b1), (w2, b2), (w3, b3), (w4, b4) = raw
    h = jnp.maximum(x @ w1.T + b1, 0.0)
    h = jnp.maximum(h @ w2.T + b2, 0.0)
    h = jnp.maximum(h @ w3.T + b3, 0.0)
    return h @ w4.T + b4


if __name__ == "__main__":
    key = jax.random.PRNGKey(0)
    kx, kx2, kp = jax.random.split(key, 3)
    raw = init_params(kp)
    params = pad_params(raw)

    # Small-batch case (single grid step, TM=128 with tail padding).
    batch = 8
    x = jax.random.normal(kx, (batch, IN_FEATURES), jnp.float32)
    out = jax.block_until_ready(final_model_forward(x, params))
    ref = reference_forward(x, raw)
    assert out.shape == (batch, 1), out.shape
    # bf16 matmul operands => loosened tolerance vs the f32 reference.
    assert jnp.allclose(out, ref, atol=5e-2, rtol=5e-2), "mismatch vs reference (batch=8)"

    # Multi-tile case: exercises the batch grid + tail padding path (TM=128, grid=3).
    batch2 = 300
    x2 = jax.random.normal(kx2, (batch2, IN_FEATURES), jnp.float32)
    out2 = jax.block_until_ready(final_model_forward(x2, params, tm_max=128))
    ref2 = reference_forward(x2, raw)
    assert out2.shape == (batch2, 1), out2.shape
    assert jnp.allclose(out2, ref2, atol=5e-2, rtol=5e-2), "mismatch vs reference (batch=300)"

    print("KERNEL_OK")
</pallas_src>

<mosaic_0001>
module attributes {stable_mosaic.version = 11 : i64} {
  func.func @mlp_kernel(%arg0: i32, %arg1: memref<128x32xf32, #tpu.memory_space<vmem>>, %arg2: memref<16x32xbf16, #tpu.memory_space<vmem>>, %arg3: memref<16x1xf32, #tpu.memory_space<vmem>>, %arg4: memref<8x16xbf16, #tpu.memory_space<vmem>>, %arg5: memref<8x1xf32, #tpu.memory_space<vmem>>, %arg6: memref<8x8xbf16, #tpu.memory_space<vmem>>, %arg7: memref<8x1xf32, #tpu.memory_space<vmem>>, %arg8: memref<8x1xf32, #tpu.memory_space<vmem>>, %arg9: memref<1x1xf32, #tpu.memory_space<smem>>, %arg10: memref<1x128xf32, #tpu.memory_space<vmem>>) attributes {dimension_semantics = [#tpu.dimension_semantics<parallel>], iteration_bounds = array<i64: 1>, scalar_prefetch = 0 : i64, scratch_operands = 0 : i64, tpu.core_type = #tpu.core_type<tc>, window_params = [{transform_indices = @transform_0, window_bounds = array<i64: 128, 32>}, {pipeline_mode = #tpu.pipeline_mode<synchronous>, transform_indices = @transform_1, window_bounds = array<i64: 16, 32>}, {pipeline_mode = #tpu.pipeline_mode<synchronous>, transform_indices = @transform_2, window_bounds = array<i64: 16, 1>}, {pipeline_mode = #tpu.pipeline_mode<synchronous>, transform_indices = @transform_3, window_bounds = array<i64: 8, 16>}, {pipeline_mode = #tpu.pipeline_mode<synchronous>, transform_indices = @transform_4, window_bounds = array<i64: 8, 1>}, {pipeline_mode = #tpu.pipeline_mode<synchronous>, transform_indices = @transform_5, window_bounds = array<i64: 8, 8>}, {pipeline_mode = #tpu.pipeline_mode<synchronous>, transform_indices = @transform_6, window_bounds = array<i64: 8, 1>}, {pipeline_mode = #tpu.pipeline_mode<synchronous>, transform_indices = @transform_7, window_bounds = array<i64: 8, 1>}, {transform_indices = @transform_8, window_bounds = array<i64: 1, 1>}, {transform_indices = @transform_9, window_bounds = array<i64: 1, 128>}]} {
    %c0 = arith.constant 0 : index
    %c0_0 = arith.constant 0 : index
    %0 = vector.load %arg1[%c0, %c0_0] : memref<128x32xf32, #tpu.memory_space<vmem>>, vector<128x32xf32>
    %1 = tpu.transpose %0, [1, 0] : vector<128x32xf32> -> vector<32x128xf32>
    %2 = arith.truncf %1 : vector<32x128xf32> to vector<32x128xbf16>
    %c0_1 = arith.constant 0 : index
    %c0_2 = arith.constant 0 : index
    %3 = vector.load %arg2[%c0_1, %c0_2] : memref<16x32xbf16, #tpu.memory_space<vmem>>, vector<16x32xbf16>
    %cst = arith.constant dense<0.000000e+00> : vector<16x128xf32>
    %4 = tpu.matmul %3, %2, %cst {dimension_numbers = #tpu.dot_dimension_numbers<[1], [0], [0], [1], [0, 0, 1, 1], [], []>} : vector<16x32xbf16>, vector<32x128xbf16>, vector<16x128xf32> -> vector<16x128xf32>
    %c0_3 = arith.constant 0 : index
    %c0_4 = arith.constant 0 : index
    %5 = vector.load %arg3[%c0_3, %c0_4] : memref<16x1xf32, #tpu.memory_space<vmem>>, vector<16x1xf32>
    %6 = vector.broadcast %5 : vector<16x1xf32> to vector<16x128xf32>
    %7 = arith.addf %4, %6 : vector<16x128xf32>
    %cst_5 = arith.constant 0.000000e+00 : f32
    %8 = vector.broadcast %cst_5 : f32 to vector<16x128xf32>
    %9 = arith.maximumf %7, %8 : vector<16x128xf32>
    %c0_6 = arith.constant 0 : index
    %c0_7 = arith.constant 0 : index
    %10 = vector.load %arg4[%c0_6, %c0_7] : memref<8x16xbf16, #tpu.memory_space<vmem>>, vector<8x16xbf16>
    %11 = arith.truncf %9 : vector<16x128xf32> to vector<16x128xbf16>
    %cst_8 = arith.constant dense<0.000000e+00> : vector<8x128xf32>
    %12 = tpu.matmul %10, %11, %cst_8 {dimension_numbers = #tpu.dot_dimension_numbers<[1], [0], [0], [1], [0, 0, 1, 1], [], []>} : vector<8x16xbf16>, vector<16x128xbf16>, vector<8x128xf32> -> vector<8x128xf32>
    %c0_9 = arith.constant 0 : index
    %c0_10 = arith.constant 0 : index
    %13 = vector.load %arg5[%c0_9, %c0_10] : memref<8x1xf32, #tpu.memory_space<vmem>>, vector<8x1xf32>
    %14 = vector.broadcast %13 : vector<8x1xf32> to vector<8x128xf32>
    %15 = arith.addf %12, %14 : vector<8x128xf32>
    %cst_11 = arith.constant 0.000000e+00 : f32
    %16 = vector.broadcast %cst_11 : f32 to vector<8x128xf32>
    %17 = arith.maximumf %15, %16 : vector<8x128xf32>
    %c0_12 = arith.constant 0 : index
    %c0_13 = arith.constant 0 : index
    %18 = vector.load %arg6[%c0_12, %c0_13] : memref<8x8xbf16, #tpu.memory_space<vmem>>, vector<8x8xbf16>
    %19 = arith.truncf %17 : vector<8x128xf32> to vector<8x128xbf16>
    %cst_14 = arith.constant dense<0.000000e+00> : vector<8x128xf32>
    %20 = tpu.matmul %18, %19, %cst_14 {dimension_numbers = #tpu.dot_dimension_numbers<[1], [0], [0], [1], [0, 0, 1, 1], [], []>} : vector<8x8xbf16>, vector<8x128xbf16>, vector<8x128xf32> -> vector<8x128xf32>
    %c0_15 = arith.constant 0 : index
    %c0_16 = arith.constant 0 : index
    %21 = vector.load %arg7[%c0_15, %c0_16] : memref<8x1xf32, #tpu.memory_space<vmem>>, vector<8x1xf32>
    %22 = vector.broadcast %21 : vector<8x1xf32> to vector<8x128xf32>
    %23 = arith.addf %20, %22 : vector<8x128xf32>
    %cst_17 = arith.constant 0.000000e+00 : f32
    %24 = vector.broadcast %cst_17 : f32 to vector<8x128xf32>
    %25 = arith.maximumf %23, %24 : vector<8x128xf32>
    %c0_18 = arith.constant 0 : index
    %c0_19 = arith.constant 0 : index
    %26 = vector.load %arg8[%c0_18, %c0_19] : memref<8x1xf32, #tpu.memory_space<vmem>>, vector<8x1xf32>
    %27 = vector.broadcast %26 : vector<8x1xf32> to vector<8x128xf32>
    %28 = arith.mulf %25, %27 : vector<8x128xf32>
    %cst_20 = arith.constant dense<0.000000e+00> : vector<128xf32>
    %29 = vector.multi_reduction <add>, %28, %cst_20 [0] : vector<8x128xf32> to vector<128xf32>
    %30 = vector.shape_cast %29 : vector<128xf32> to vector<1x128xf32>
    %c0_21 = arith.constant 0 : index
    %c0_22 = arith.constant 0 : index
    %31 = memref.load %arg9[%c0_21, %c0_22] : memref<1x1xf32, #tpu.memory_space<smem>>
    %32 = vector.broadcast %31 : f32 to vector<1x128xf32>
    %33 = arith.addf %30, %32 : vector<1x128xf32>
    %c0_23 = arith.constant 0 : index
    %c0_24 = arith.constant 0 : index
    %34 = vector.load %arg10[%c0_23, %c0_24] : memref<1x128xf32, #tpu.memory_space<vmem>>, vector<1x128xf32>
    tpu.vector_store %arg10[%c0_23, %c0_24], %33 {strides = array<i32>} : memref<1x128xf32, #tpu.memory_space<vmem>>, vector<1x128xf32>,
    return
  }
  func.func @transform_0(%arg0: i32) -> (i32, i32) {
    %c0_i32 = arith.constant 0 : i32
    %c0_i32_0 = arith.constant 0 : i32
    return %arg0, %c0_i32 : i32, i32
  }
  func.func @transform_1(%arg0: i32) -> (i32, i32) {
    %c0_i32 = arith.constant 0 : i32
    %c0_i32_0 = arith.constant 0 : i32
    %c0_i32_1 = arith.constant 0 : i32
    return %c0_i32, %c0_i32_0 : i32, i32
  }
  func.func @transform_2(%arg0: i32) -> (i32, i32) {
    %c0_i32 = arith.constant 0 : i32
    %c0_i32_0 = arith.constant 0 : i32
    %c0_i32_1 = arith.constant 0 : i32
    return %c0_i32, %c0_i32_0 : i32, i32
  }
  func.func @transform_3(%arg0: i32) -> (i32, i32) {
    %c0_i32 = arith.constant 0 : i32
    %c0_i32_0 = arith.constant 0 : i32
    %c0_i32_1 = arith.constant 0 : i32
    return %c0_i32, %c0_i32_0 : i32, i32
  }
  func.func @transform_4(%arg0: i32) -> (i32, i32) {
    %c0_i32 = arith.constant 0 : i32
    %c0_i32_0 = arith.constant 0 : i32
    %c0_i32_1 = arith.constant 0 : i32
    return %c0_i32, %c0_i32_0 : i32, i32
  }
  func.func @transform_5(%arg0: i32) -> (i32, i32) {
    %c0_i32 = arith.constant 0 : i32
    %c0_i32_0 = arith.constant 0 : i32
    %c0_i32_1 = arith.constant 0 : i32
    return %c0_i32, %c0_i32_0 : i32, i32
  }
  func.func @transform_6(%arg0: i32) -> (i32, i32) {
    %c0_i32 = arith.constant 0 : i32
    %c0_i32_0 = arith.constant 0 : i32
    %c0_i32_1 = arith.constant 0 : i32
    return %c0_i32, %c0_i32_0 : i32, i32
  }
  func.func @transform_7(%arg0: i32) -> (i32, i32) {
    %c0_i32 = arith.constant 0 : i32
    %c0_i32_0 = arith.constant 0 : i32
    %c0_i32_1 = arith.constant 0 : i32
    return %c0_i32, %c0_i32_0 : i32, i32
  }
  func.func @transform_8(%arg0: i32) -> (i32, i32) {
    %c0_i32 = arith.constant 0 : i32
    %c0_i32_0 = arith.constant 0 : i32
    %c0_i32_1 = arith.constant 0 : i32
    return %c0_i32, %c0_i32_0 : i32, i32
  }
  func.func @transform_9(%arg0: i32) -> (i32, i32) {
    %c0_i32 = arith.constant 0 : i32
    %c0_i32_0 = arith.constant 0 : i32
    return %c0_i32, %arg0 : i32, i32
  }
}

</mosaic_0001>

<bundles_post_ra>
// kernel: tpu_custom_call.1
= control target key start
LH: loop header
LB: loop body
LE: loop exit
PB: predicated region body
PF: predicated region fallthrough
CT: control target
= control target key end

     0   :  { %s505_s0 = inlined_call_operand.vmem [shape: f32[128,32], index: 0, kind: input, shape index: {}]   ;;  %s506_s1 = inlined_call_operand.vmem [shape: bf16[16,32], index: 1, kind: input, shape index: {}]   ;;  %s507_s2 = inlined_call_operand.vmem [shape: f32[16,1], index: 2, kind: input, shape index: {}]   ;;  %s508_s3 = inlined_call_operand.vmem [shape: bf16[8,16], index: 3, kind: input, shape index: {}]   ;;  %s509_s4 = inlined_call_operand.vmem [shape: f32[8,1], index: 4, kind: input, shape index: {}]   ;;  %s510_s5 = inlined_call_operand.vmem [shape: bf16[8,8], index: 5, kind: input, shape index: {}]   ;;  %s511_s6 = inlined_call_operand.vmem [shape: f32[8,1], index: 6, kind: input, shape index: {}]   ;;  %s512_s7 = inlined_call_operand.vmem [shape: f32[8,1], index: 7, kind: input, shape index: {}]   ;;  %s513_s8 = inlined_call_operand.<no memory space> [shape: f32[1,1], index: 8, kind: input, shape index: {}]   ;;  %s514_s9 = inlined_call_operand.hbm [shape: f32[1,128], index: 9, kind: output, shape index: {}]  }
   0x1   :  { %v35_v0 = vld [vmem:[%s505_s0] sm:$0xff]  ;;  %v36_v1 = vld [vmem:[%s505_s0 + $0x8] sm:$0xff]  ;;  %v37_v2 = vld [vmem:[%s505_s0 + $0x10] sm:$0xff] }
   0x2   :  { %51 = vxpose.xlu0.b32.start [1/16] (narrow) %v35_v0, 32 }
   0x6   :  { %52 = vxpose.xlu0.b32.cont [2/16] (narrow) %v36_v1, 32 }
   0x7   :  { %15 = vsyncpa [#allocation4], 0  ;;  %v354_v3 = vmov 0.0   ;;  %v38_v4 = vld [vmem:[%s505_s0 + $0x18] sm:$0xff]  ;;  %v39_v5 = vld [vmem:[%s505_s0 + $0x20] sm:$0xff]  ;;  %vm355_vm0 = vmmov 0  }
   0x8   :  { %303 = vmatprep.subr.bf16.mxu0 %v354_v3  ;;  %311 = vmatprep.subr.bf16.mxu1 %v354_v3  ;;  %v40_v6 = vld [vmem:[%s505_s0 + $0x28] sm:$0xff]  ;;  %v87_v7 = vld [vmem:[%s507_s2] sm:$0xff]  ;;  %v356_v8 = vmov 0   ;;  %v41_v9 = vld [vmem:[%s505_s0 + $0x30] sm:$0xff]  ;;  %vm104_vm1 = vcmask 261120   ;;  %vm159_vm2 = vcmask 130048  }
   0x9   :  { %307 = vmatprep.mubr.msk.bf16.mxu0 %vm355_vm0, %v354_v3  ;;  %313 = vmatprep.mubr.msk.bf16.mxu1 %vm355_vm0, %v354_v3  ;;  %v88_v10 = vld [vmem:[%s507_s2 + $0x8] sm:$0xff]  ;;  %v42_v11 = vld [vmem:[%s505_s0 + $0x38] sm:$0xff]  ;;  %v153_v12 = vld [vmem:[%s509_s4] sm:$0xff]  ;;  %vm216_vm3 = vcmask 1043456   ;;  %vm212_vm4 = vcmask 64512  }
   0xa   :  { %53 = vxpose.xlu0.b32.cont [3/16] (narrow) %v37_v2, 32  ;;  %327 = vset.pattern.permute.xlu1 %v356_v8  ;;  %v43_v13 = vld [vmem:[%s505_s0 + $0x40] sm:$0xff]  ;;  %v44_v15 = vld [vmem:[%s505_s0 + $0x48] sm:$0xff]  ;;  %v45_v17 = vld [vmem:[%s505_s0 + $0x50] sm:$0xff]  ;;  %v275_v2 = vstv %s513_s8 }
   0xb   :  { %91 = vperm.xlu1 %327, %v87_v7   ;;  %v206_v14 = vld [vmem:[%s511_s6] sm:$0xff]  ;;  %v46_v18 = vld [vmem:[%s505_s0 + $0x58] sm:$0xff]  ;;  %v48_v20 = vld [vmem:[%s505_s0 + $0x68] sm:$0xff] }
   0xc   :  { %v261_v16 = vld [vmem:[%s512_s7] sm:$0xff]  ;;  %v49_v21 = vld [vmem:[%s505_s0 + $0x70] sm:$0xff]  ;;  %v50_v22 = vld [vmem:[%s505_s0 + $0x78] sm:$0xff] }
   0xd   :  { %v47_v19 = vld [vmem:[%s505_s0 + $0x60] sm:$0xff] }
   0xe   :  { %54 = vxpose.xlu0.b32.cont [4/16] (narrow) %v38_v4, 32  ;;  %v329_v29 = vld [vmem:[%s506_s1] sm:$0xff]  }
   0xf   :  { %96 = vperm.xlu1 %327, %v88_v10   ;;  %v151_v41 = vld [vmem:[%s508_s3] sm:$0xf] }
  0x10   :  { %v204_v51 = vld [vmem:[%s510_s5] sm:$0xf]  ;;  %s357_s5 = smov [#allocation3]  }
  0x11   :  { %s284_s10 = sshll.u32 %s357_s5, 4  ;;  %s285_s10 = int_to_ptr.vmem [resolvable:$true] %s284_s10 }
  0x12   :  { %55 = vxpose.xlu0.b32.cont [5/16] (narrow) %v39_v5, 32  ;;  %s330_s11 = scalar_lea.vmem %s285_s10, 16  ;;  %s334_s12 = scalar_lea.vmem %s285_s10, 32 }
  0x13   :  { %156 = vperm.xlu1 %327, %v153_v12   ;;  %p331_p0 = scmp.ne.s32.totalorder %s285_s10, %s330_s11  ;;  %p335_p1 = scmp.lt.s32.totalorder %s285_s10, %s285_s10 }
  0x14   :  { %p336_p2 = scmp.lt.s32.totalorder %s334_s12, %s330_s11 }
  0x16   :  { %56 = vxpose.xlu0.b32.cont [6/16] (narrow) %v40_v6, 32  ;;  %p337_p3 = por %p336_p2, %p335_p1 }
  0x17   :  { %209 = vperm.xlu1 %327, %v206_v14  }
  0x18   :  { %p338_p4 = pnand %p337_p3, %p331_p0 }
  0x1a   :  { %57 = vxpose.xlu0.b32.cont [7/16] (narrow) %v41_v9, 32 }
  0x1b   :  { %264 = vperm.xlu1 %327, %v261_v16  }
  0x1e   :  { %58 = vxpose.xlu0.b32.cont [8/16] (narrow) %v42_v11, 32 }
  0x22   :  { %59 = vxpose.xlu0.b32.cont [9/16] (narrow) %v43_v13, 32 }
  0x26   :  { %60 = vxpose.xlu0.b32.cont [10/16] (narrow) %v44_v15, 32 }
  0x2a   :  { %61 = vxpose.xlu0.b32.cont [11/16] (narrow) %v45_v17, 32 }
  0x2e   :  { %62 = vxpose.xlu0.b32.cont [12/16] (narrow) %v46_v18, 32 }
  0x32   :  { %63 = vxpose.xlu0.b32.cont [13/16] (narrow) %v47_v19, 32 }
  0x36   :  { %64 = vxpose.xlu0.b32.cont [14/16] (narrow) %v48_v20, 32 }
  0x3a   :  { %65 = vxpose.xlu0.b32.cont [15/16] (narrow) %v49_v21, 32 }
  0x3e   :  { %66 = vxpose.xlu0.b32.end [16/16] (narrow) %v50_v22, 32 }
  0x67   :  { %328 = vset.pattern.permute.xlu0 %v356_v8 }
  0x82   :  { %v67_v23 = vpop.trf.xlu0 }
  0x86   :  { %v68_v24 = vpop.trf.xlu0 }
  0x87   :  { %v83_v25 = vpack.c.bf16 %v68_v24, %v67_v23 }
  0x89   :  { %304 = vmatpush3.bf16.msra.mxu0 %v83_v25 }
  0x8a   :  { %v69_v26 = vpop.trf.xlu0  ;;  %305 = vmatprep.subr.bf16.mxu0 %v354_v3  ;;  %v92_v30 = vpop.permute.xlu1 %91 }
  0x8e   :  { %v70_v27 = vpop.trf.xlu0  ;;  %v97_v34 = vpop.permute.xlu1 %96 }
  0x8f   :  { %v84_v28 = vpack.c.bf16 %v70_v27, %v69_v26 }
  0x91   :  { %306 = vmatpush3.bf16.msra.mxu0 %v84_v28 }
  0x92   :  { %v157_v42 = vpop.permute.xlu1 %156 }
  0x94   :  { %308 = vmatmul.mubr.msk.bf16.vlgmr.msra.gmra.mrb[0].mxu0 %vm104_vm1, %v329_v29 }
  0x96   :  { %v210_v52 = vpop.permute.xlu1 %209 }
  0x9a   :  { %v265_v59 = vpop.permute.xlu1 %264 }
 0x167   :  { %v142_v31 = vpop.f32.mrb[0].mxu0 }
 0x168   :  { %v143_v32 = vadd.f32 %v142_v31, %v92_v30  ;;  %v309_v33 = vpop.f32.mrb[1].mxu0 }
 0x169   :  { %v145_v35 = vpop.f32.mrb[2].mxu0 }
 0x16a   :  { %v146_v36 = vadd.f32 %v145_v35, %v97_v34  ;;  %v310_v37 = vpop.f32.mrb[3].mxu0  ;;  %v149_v38 = vmax.f32 %v143_v32, 0.0 }
 0x16c   :  { %v150_v39 = vmax.f32 %v146_v36, 0.0 }
 0x16e   :  { %v152_v40 = vpack.c.bf16 %v150_v39, %v149_v38 }
 0x170   :  { %312 = vmatpush3.bf16.msra.mxu1 %v152_v40 }
 0x171   :  { %317 = vmatprep.subr.bf16.mxu1 %v354_v3 }
 0x173   :  { %314 = vmatmul.mubr.msk.bf16.vlgmr.msra.gmra.mrb[0].mxu1 %vm159_vm2, %v151_v41 }
 0x174   :  { %319 = vmatprep.mubr.msk.bf16.mxu1 %vm355_vm0, %v354_v3 }
 0x246   :  { %v197_v43 = vpop.f32.mrb[0].mxu1 }
 0x247   :  { %v198_v44 = vadd.f32 %v197_v43, %v157_v42  ;;  %v315_v45 = vpop.f32.mrb[1].mxu1 }
 0x248   :  { %v200_v46 = vpop.f32.mrb[2].mxu1 }
 0x249   :  { %v203_v47 = vmax.f32 %v198_v44, 0.0  ;;  %v316_v48 = vpop.f32.mrb[3].mxu1 }
 0x24b   :  { %v205_v49 = vpack.c.bf16 %v203_v47, %v203_v47 }
 0x24d   :  { %v218_v50 = vsel %vm216_vm3, %v205_v49, 0 }
 0x24e   :  { %318 = vmatpush3.bf16.msra.mxu1 %v218_v50 }
 0x251   :  { %320 = vmatmul.mubr.msk.bf16.vlgmr.msra.gmra.mrb[4].mxu1 %vm212_vm4, %v204_v51 }
 0x324   :  { %v254_v53 = vpop.f32.mrb[4].mxu1 }
 0x325   :  { %v255_v54 = vadd.f32 %v254_v53, %v210_v52  ;;  %v321_v55 = vpop.f32.mrb[5].mxu1 }
 0x326   :  { %v257_v56 = vpop.f32.mrb[6].mxu1 }
 0x327   :  { %v260_v57 = vmax.f32 %v255_v54, 0.0  ;;  %v322_v58 = vpop.f32.mrb[7].mxu1 }
 0x329   :  { %v267_v60 = vmul.f32 %v265_v59, %v260_v57 }
 0x32b   :  { %v268_v61 = vrot.slane %v267_v60, 4 }
 0x32d   :  { %v269_v62 = vadd.f32 %v268_v61, %v267_v60 }
 0x32f   :  { %v270_v63 = vrot.slane %v269_v62, 2 }
 0x331   :  { %v271_v0 = vadd.f32 %v270_v63, %v269_v62 }
 0x333   :  { %v272_v1 = vrot.slane %v271_v0, 1 }
 0x335   :  { %v273_v3 = vadd.f32 %v272_v1, %v271_v0 }
 0x337   :  { %v276_v4 = vadd.f32 %v275_v2, %v273_v3 }
 0x339   :  { %277 = vst [vmem:[#allocation3] sm:$0x1] %v276_v4 }
 0x33a   :  { %341 = shalt.err (!%p338_p4)
}
 0x33b   :  { %s342_s14 = scalar_lea.hbm %s514_s9, 16 }
 0x33c   :  { %p343_p5 = scmp.ne.s32.totalorder %s514_s9, %s342_s14  ;;  %p346_p6 = scmp.lt.u32.totalorder %s342_s14, %s514_s9 }
 0x33e   :  { %p348_p7 = pnand %p346_p6, %p343_p5 }
 0x340   :  { %351 = shalt.err (!%p348_p7)
}
 0x341   :  { %287 = dma.vmem_to_hbm [thread:$0]  %s285_s10, 16, %s514_s9, [#allocation4]  }
 0x342   :  { %352 = dma.done.wait [#allocation4], 16  }
 0x343   :  { %353 = vsyncadd [#allocation4], 4294967280 }
 0x344   :  { %291 = vsyncpa [#allocation4], 1 }

</bundles_post_ra>
